<compile_context>
chip_gen: v6e
topology: v6e:2x2x1
jax: 0.10.0
libtpu: 0.0.40
codegen_flags: <defaults>
</compile_context>

<pallas_src>
import functools
import math

import jax
import jax.numpy as jnp
import numpy as np
from jax.experimental import pallas as pl
from jax.experimental.pallas import tpu as pltpu


def _fusion_kernel(xl_ref, xc_ref, xr_ref, dw_ref, b1_ref, pwb_ref, b2_ref,
                   sel_ref, fcw_ref, fcb_ref, out_ref, *, n, h, w, cin):
    # xl/xc/xr_ref: (N*(H+2), W*Cin) height-zero-padded, lane-packed slabs of
    #               the left / center / right horizontal tap (zero-filled
    #               +/-Cin lane shifts built on the host).
    # dw_ref:  (9, W*Cin)        depthwise 3x3 weights (BN1 scale folded, tiled)
    # b1_ref:  (1, W*Cin)        BN1 shift (tiled)
    # pwb_ref: (W*Cin, W*Coutp)  block-diag 1x1 weights (BN2 scale folded), bf16
    # b2_ref:  (1, W*Coutp)      BN2 shift (tiled, zero on pad channels)
    # sel_ref: (N, N*(H+2)-2)    per-batch row-selection matrix (pool sum), bf16
    # fcw_ref: (W*Coutp, NCpad)  fc2 weight, W-tiled, /(H*W) folded, bf16
    # fcb_ref: (1, NCpad)        fc2 bias (lane-padded)
    # out_ref: (N, NCpad)
    L = w * cin                      # packed lane width (= 128 for W=16, Cin=8)
    R = n * (h + 2)                  # total slab rows

    x_l = xl_ref[...]
    x_c = xc_ref[...]
    x_r = xr_ref[...]
    dwv = dw_ref[...]                # (9, L)  hoisted once, not per-tap

    # Depthwise 3x3 (stride 1, padding 1), horizontal-then-vertical: for each
    # dy combine the three dx taps on the FULL slab (no row slicing), then sum
    # three row-shifted windows -> only 3 sublane-misaligned slices, and the
    # accumulator starts from the first product (no zeros+add).
    def hcomb(dy):
        k = 3 * dy
        return (x_l * dwv[k:k + 1, :] + x_c * dwv[k + 1:k + 2, :]
                + x_r * dwv[k + 2:k + 3, :])

    g0, g1, g2 = hcomb(0), hcomb(1), hcomb(2)
    acc = g0[0:R - 2, :] + g1[1:R - 1, :] + g2[2:R, :]          # (R-2, W*Cin)

    # bn1 (scale folded into dw) + relu1  (f32 VPU work; v5e has no bf16 VALU)
    y = jnp.maximum(acc + b1_ref[...], 0.0)

    # conv1_1 (1x1) as a single block-diagonal MXU matmul on packed lanes
    # (bf16 operands, f32 accumulation), then bn1_1 shift + relu1_1.
    z = jnp.dot(y.astype(jnp.bfloat16), pwb_ref[...],
                preferred_element_type=jnp.float32)             # (R-2, W*Coutp)
    z = jnp.maximum(z + b2_ref[...], 0.0)

    # Global average pool: per-batch sum over its H valid rows via a selection
    # matmul (padding / inter-batch garbage rows carry zero weight); the
    # 1/(H*W) and the W-group sum are folded into fcw.
    pooled = jnp.dot(sel_ref[...], z.astype(jnp.bfloat16),
                     preferred_element_type=jnp.float32)        # (N, W*Coutp)

    # fc2 -> single lane-dense batched store (sliced back to numclass on host)
    out_ref[...] = (jnp.dot(pooled.astype(jnp.bfloat16), fcw_ref[...],
                            preferred_element_type=jnp.float32)
                    + fcb_ref[...])


def init_params(key, channel, numclass, model_num=2):
    """Deterministic synthetic parameters matching the PyTorch __init__ shapes/init."""
    cin = channel * model_num
    cout = channel
    k0, k1, k2, k3 = jax.random.split(key, 4)

    # conv1: depthwise, torch weight (Cin, 1, 3, 3), init N(0, sqrt(2/(3*3*Cin)))
    dw_t = jax.random.normal(k0, (cin, 1, 3, 3), jnp.float32) * math.sqrt(2.0 / (3 * 3 * cin))
    dw = jnp.transpose(dw_t[:, 0], (1, 2, 0))                     # (3, 3, Cin)

    # conv1_1: torch weight (Cout, Cin, 1, 1), init N(0, sqrt(2/(1*1*Cout)))
    pw_t = jax.random.normal(k1, (cout, cin, 1, 1), jnp.float32) * math.sqrt(2.0 / cout)
    pw = jnp.transpose(pw_t[:, :, 0, 0], (1, 0))                  # (Cin, Cout)

    # BatchNorms: gamma=1, beta=0, running_mean=0, running_var=1 (inference).
    eps = 1e-5
    s1 = jnp.full((1, 1, cin), 1.0 / math.sqrt(1.0 + eps), jnp.float32)
    b1 = jnp.zeros((1, 1, cin), jnp.float32)
    s2 = jnp.full((1, cout), 1.0 / math.sqrt(1.0 + eps), jnp.float32)
    b2 = jnp.zeros((1, cout), jnp.float32)

    # fc2: torch Linear default init U(-1/sqrt(in_features), 1/sqrt(in_features))
    bound = 1.0 / math.sqrt(cout)
    fcw_t = jax.random.uniform(k2, (numclass, cout), jnp.float32, -bound, bound)
    fcw = jnp.transpose(fcw_t)                                    # (Cout, numclass)
    fcb = jax.random.uniform(k3, (1, numclass), jnp.float32, -bound, bound)

    return dict(dw=dw, s1=s1, b1=b1, pw=pw, s2=s2, b2=b2, fcw=fcw, fcb=fcb)


def fusion_forward(x_nchw, params):
    """x_nchw: (N, channel*model_num, H, W) float32; returns (N, numclass)."""
    n, cin, h, w = x_nchw.shape
    cout = params["pw"].shape[1]
    numclass = params["fcw"].shape[1]
    coutp = pl.cdiv(cout, 8) * 8           # pad Cout (4->8) so W*Coutp is lane-dense
    ncpad = pl.cdiv(numclass, 128) * 128   # lane-dense fc output, sliced back below

    # ---- activation slabs: NCHW -> NHWC -> zero-pad H,W -> lane-pack (W*Cin) ----
    # The three horizontal taps (x-1, x, x+1) are shipped as pre-shifted,
    # zero-filled lane-packed copies (layout plumbing only, no compute hoisted).
    x_nhwc = jnp.transpose(x_nchw, (0, 2, 3, 1)).astype(jnp.float32)
    x_pad = jnp.pad(x_nhwc, ((0, 0), (1, 1), (1, 1), (0, 0)))     # (N,H+2,W+2,Cin)

    def slab(xs):
        return xs.reshape(n * (h + 2), w * cin)

    x_l = slab(x_pad[:, :, 0:w, :])        # input pixel x-1 (zero at x=0)
    x_c = slab(x_pad[:, :, 1:w + 1, :])    # input pixel x
    x_r = slab(x_pad[:, :, 2:w + 2, :])    # input pixel x+1 (zero at x=W-1)

    # ---- fold BN1 scale into depthwise weights; tile to packed-lane layout ----
    s1 = params["s1"].reshape(1, cin)
    b1 = params["b1"].reshape(1, cin)
    dw_folded = params["dw"].reshape(9, cin) * s1                 # (9, Cin)
    dw_tiled = jnp.tile(dw_folded, (1, w))                        # (9, W*Cin)
    b1_tiled = jnp.tile(b1, (1, w))                               # (1, W*Cin)

    # ---- fold BN2 scale into 1x1 weights; pad Cout; block-diagonal; bf16 ----
    s2 = params["s2"].reshape(1, cout)
    b2 = params["b2"].reshape(1, cout)
    pw_folded = jnp.pad(params["pw"] * s2, ((0, 0), (0, coutp - cout)))   # (Cin, Coutp)
    pw_block = jnp.kron(jnp.eye(w, dtype=jnp.float32), pw_folded)         # (W*Cin, W*Coutp)
    pw_block = pw_block.astype(jnp.bfloat16)
    b2_tiled = jnp.tile(jnp.pad(b2, ((0, 0), (0, coutp - cout))), (1, w))  # (1, W*Coutp)

    # ---- per-batch row-selection matrix for the global pool sum (0/1, bf16) ----
    rows_out = n * (h + 2) - 2
    sel_np = np.zeros((n, rows_out), np.float32)
    for b in range(n):
        sel_np[b, b * (h + 2): b * (h + 2) + h] = 1.0
    sel = jnp.asarray(sel_np, dtype=jnp.bfloat16)

    # ---- fc2: fold 1/(H*W), zero rows for pad channels, W-tile, pad lanes ----
    fcw_pad = jnp.pad(params["fcw"] / float(h * w), ((0, coutp - cout), (0, 0)))
    fcw_rep = jnp.tile(fcw_pad, (w, 1))                           # (W*Coutp, numclass)
    fcw_t = jnp.pad(fcw_rep, ((0, 0), (0, ncpad - numclass))).astype(jnp.bfloat16)
    fcb_t = jnp.pad(params["fcb"], ((0, 0), (0, ncpad - numclass)))

    operands = (x_l, x_c, x_r, dw_tiled, b1_tiled, pw_block, b2_tiled, sel,
                fcw_t, fcb_t)

    # Advisory cost estimate for XLA's scheduler around the custom call.
    flops = int(2 * 9 * n * (h + 2) * w * cin                     # 3x3 taps
                + 2 * rows_out * (w * cin) * (w * coutp)          # 1x1 matmul
                + 2 * n * rows_out * (w * coutp)                  # pool matmul
                + 2 * n * (w * coutp) * ncpad)                    # fc matmul
    bytes_accessed = int(sum(a.size * a.dtype.itemsize for a in operands)
                         + n * ncpad * 4)

    kernel = functools.partial(_fusion_kernel, n=n, h=h, w=w, cin=cin)
    vmem_spec = pl.BlockSpec(memory_space=pltpu.MemorySpace.VMEM)
    # Single invocation (no grid): whole batch working set is a few tens of KB.
    out = pl.pallas_call(
        kernel,
        out_shape=jax.ShapeDtypeStruct((n, ncpad), jnp.float32),
        in_specs=[vmem_spec] * len(operands),
        out_specs=vmem_spec,
        cost_estimate=pl.CostEstimate(flops=flops, transcendentals=0,
                                      bytes_accessed=bytes_accessed),
    )(*operands)
    return out[:, :numclass]


def reference_forward(x_nchw, params):
    """Pure-JAX (XLA conv) reference for validation."""
    cin = x_nchw.shape[1]
    dw_oihw = jnp.transpose(params["dw"], (2, 0, 1))[:, None]     # (Cin,1,3,3)
    y = jax.lax.conv_general_dilated(
        x_nchw, dw_oihw, (1, 1), "SAME", feature_group_count=cin,
        dimension_numbers=("NCHW", "OIHW", "NCHW"))
    y = y * params["s1"].reshape(1, cin, 1, 1) + params["b1"].reshape(1, cin, 1, 1)
    y = jnp.maximum(y, 0.0)
    pw_oihw = jnp.transpose(params["pw"], (1, 0))[:, :, None, None]  # (Cout,Cin,1,1)
    z = jax.lax.conv_general_dilated(
        y, pw_oihw, (1, 1), "VALID", dimension_numbers=("NCHW", "OIHW", "NCHW"))
    cout = z.shape[1]
    z = jnp.maximum(z * params["s2"].reshape(1, cout, 1, 1)
                    + params["b2"].reshape(1, cout, 1, 1), 0.0)
    pooled = jnp.mean(z, axis=(2, 3))                              # (N, Cout)
    return pooled @ params["fcw"] + params["fcb"]


if __name__ == "__main__":
    # channel=4, model_num=2 -> Cin=8, spatial=16 (so W*Cin = 128 lanes),
    # numclass=10, batch=2.
    batch, channel, model_num, sptial, numclass = 2, 4, 2, 16, 10
    cin = channel * model_num

    key = jax.random.PRNGKey(0)
    kx, kp = jax.random.split(key)
    x = jax.random.normal(kx, (batch, cin, sptial, sptial), jnp.float32)
    params = init_params(kp, channel, numclass, model_num)

    out = jax.block_until_ready(fusion_forward(x, params))
    ref = jax.block_until_ready(reference_forward(x, params))
    np.testing.assert_allclose(np.asarray(out), np.asarray(ref), rtol=2e-2, atol=2e-2)

    print("KERNEL_OK")
</pallas_src>

<mosaic_0001>
module attributes {stable_mosaic.version = 11 : i64} {
  func.func @_fusion_kernel(%arg0: memref<36x128xf32, #tpu.memory_space<vmem>>, %arg1: memref<36x128xf32, #tpu.memory_space<vmem>>, %arg2: memref<36x128xf32, #tpu.memory_space<vmem>>, %arg3: memref<9x128xf32, #tpu.memory_space<vmem>>, %arg4: memref<1x128xf32, #tpu.memory_space<vmem>>, %arg5: memref<128x128xbf16, #tpu.memory_space<vmem>>, %arg6: memref<1x128xf32, #tpu.memory_space<vmem>>, %arg7: memref<2x34xbf16, #tpu.memory_space<vmem>>, %arg8: memref<128x128xbf16, #tpu.memory_space<vmem>>, %arg9: memref<1x128xf32, #tpu.memory_space<vmem>>, %arg10: memref<2x128xf32, #tpu.memory_space<vmem>>) attributes {dimension_semantics = [], scalar_prefetch = 0 : i64, scratch_operands = 0 : i64, tpu.core_type = #tpu.core_type<tc>} {
    %c0 = arith.constant 0 : index
    %c0_0 = arith.constant 0 : index
    %0 = vector.load %arg0[%c0, %c0_0] : memref<36x128xf32, #tpu.memory_space<vmem>>, vector<36x128xf32>
    %c0_1 = arith.constant 0 : index
    %c0_2 = arith.constant 0 : index
    %1 = vector.load %arg1[%c0_1, %c0_2] : memref<36x128xf32, #tpu.memory_space<vmem>>, vector<36x128xf32>
    %c0_3 = arith.constant 0 : index
    %c0_4 = arith.constant 0 : index
    %2 = vector.load %arg2[%c0_3, %c0_4] : memref<36x128xf32, #tpu.memory_space<vmem>>, vector<36x128xf32>
    %c0_5 = arith.constant 0 : index
    %c0_6 = arith.constant 0 : index
    %3 = vector.load %arg3[%c0_5, %c0_6] : memref<9x128xf32, #tpu.memory_space<vmem>>, vector<9x128xf32>
    %4 = vector.extract_strided_slice %3 {offsets = [0, 0], sizes = [1, 128], strides = [1, 1]} : vector<9x128xf32> to vector<1x128xf32>
    %5 = vector.broadcast %4 : vector<1x128xf32> to vector<36x128xf32>
    %6 = arith.mulf %0, %5 : vector<36x128xf32>
    %7 = vector.extract_strided_slice %3 {offsets = [1, 0], sizes = [1, 128], strides = [1, 1]} : vector<9x128xf32> to vector<1x128xf32>
    %8 = vector.broadcast %7 : vector<1x128xf32> to vector<36x128xf32>
    %9 = arith.mulf %1, %8 : vector<36x128xf32>
    %10 = arith.addf %6, %9 : vector<36x128xf32>
    %11 = vector.extract_strided_slice %3 {offsets = [2, 0], sizes = [1, 128], strides = [1, 1]} : vector<9x128xf32> to vector<1x128xf32>
    %12 = vector.broadcast %11 : vector<1x128xf32> to vector<36x128xf32>
    %13 = arith.mulf %2, %12 : vector<36x128xf32>
    %14 = arith.addf %10, %13 : vector<36x128xf32>
    %15 = vector.extract_strided_slice %3 {offsets = [3, 0], sizes = [1, 128], strides = [1, 1]} : vector<9x128xf32> to vector<1x128xf32>
    %16 = vector.broadcast %15 : vector<1x128xf32> to vector<36x128xf32>
    %17 = arith.mulf %0, %16 : vector<36x128xf32>
    %18 = vector.extract_strided_slice %3 {offsets = [4, 0], sizes = [1, 128], strides = [1, 1]} : vector<9x128xf32> to vector<1x128xf32>
    %19 = vector.broadcast %18 : vector<1x128xf32> to vector<36x128xf32>
    %20 = arith.mulf %1, %19 : vector<36x128xf32>
    %21 = arith.addf %17, %20 : vector<36x128xf32>
    %22 = vector.extract_strided_slice %3 {offsets = [5, 0], sizes = [1, 128], strides = [1, 1]} : vector<9x128xf32> to vector<1x128xf32>
    %23 = vector.broadcast %22 : vector<1x128xf32> to vector<36x128xf32>
    %24 = arith.mulf %2, %23 : vector<36x128xf32>
    %25 = arith.addf %21, %24 : vector<36x128xf32>
    %26 = vector.extract_strided_slice %3 {offsets = [6, 0], sizes = [1, 128], strides = [1, 1]} : vector<9x128xf32> to vector<1x128xf32>
    %27 = vector.broadcast %26 : vector<1x128xf32> to vector<36x128xf32>
    %28 = arith.mulf %0, %27 : vector<36x128xf32>
    %29 = vector.extract_strided_slice %3 {offsets = [7, 0], sizes = [1, 128], strides = [1, 1]} : vector<9x128xf32> to vector<1x128xf32>
    %30 = vector.broadcast %29 : vector<1x128xf32> to vector<36x128xf32>
    %31 = arith.mulf %1, %30 : vector<36x128xf32>
    %32 = arith.addf %28, %31 : vector<36x128xf32>
    %33 = vector.extract_strided_slice %3 {offsets = [8, 0], sizes = [1, 128], strides = [1, 1]} : vector<9x128xf32> to vector<1x128xf32>
    %34 = vector.broadcast %33 : vector<1x128xf32> to vector<36x128xf32>
    %35 = arith.mulf %2, %34 : vector<36x128xf32>
    %36 = arith.addf %32, %35 : vector<36x128xf32>
    %37 = vector.extract_strided_slice %14 {offsets = [0, 0], sizes = [34, 128], strides = [1, 1]} : vector<36x128xf32> to vector<34x128xf32>
    %38 = vector.extract_strided_slice %25 {offsets = [1, 0], sizes = [34, 128], strides = [1, 1]} : vector<36x128xf32> to vector<34x128xf32>
    %39 = arith.addf %37, %38 : vector<34x128xf32>
    %40 = vector.extract_strided_slice %36 {offsets = [2, 0], sizes = [34, 128], strides = [1, 1]} : vector<36x128xf32> to vector<34x128xf32>
    %41 = arith.addf %39, %40 : vector<34x128xf32>
    %c0_7 = arith.constant 0 : index
    %c0_8 = arith.constant 0 : index
    %42 = vector.load %arg4[%c0_7, %c0_8] : memref<1x128xf32, #tpu.memory_space<vmem>>, vector<1x128xf32>
    %43 = vector.broadcast %42 : vector<1x128xf32> to vector<34x128xf32>
    %44 = arith.addf %41, %43 : vector<34x128xf32>
    %cst = arith.constant 0.000000e+00 : f32
    %45 = vector.broadcast %cst : f32 to vector<34x128xf32>
    %46 = arith.maximumf %44, %45 : vector<34x128xf32>
    %47 = arith.truncf %46 : vector<34x128xf32> to vector<34x128xbf16>
    %c0_9 = arith.constant 0 : index
    %c0_10 = arith.constant 0 : index
    %48 = vector.load %arg5[%c0_9, %c0_10] : memref<128x128xbf16, #tpu.memory_space<vmem>>, vector<128x128xbf16>
    %cst_11 = arith.constant dense<0.000000e+00> : vector<34x128xf32>
    %49 = tpu.matmul %47, %48, %cst_11 {dimension_numbers = #tpu.dot_dimension_numbers<[1], [0], [0], [1], [0, 0, 1, 1], [], []>} : vector<34x128xbf16>, vector<128x128xbf16>, vector<34x128xf32> -> vector<34x128xf32>
    %c0_12 = arith.constant 0 : index
    %c0_13 = arith.constant 0 : index
    %50 = vector.load %arg6[%c0_12, %c0_13] : memref<1x128xf32, #tpu.memory_space<vmem>>, vector<1x128xf32>
    %51 = vector.broadcast %50 : vector<1x128xf32> to vector<34x128xf32>
    %52 = arith.addf %49, %51 : vector<34x128xf32>
    %cst_14 = arith.constant 0.000000e+00 : f32
    %53 = vector.broadcast %cst_14 : f32 to vector<34x128xf32>
    %54 = arith.maximumf %52, %53 : vector<34x128xf32>
    %c0_15 = arith.constant 0 : index
    %c0_16 = arith.constant 0 : index
    %55 = vector.load %arg7[%c0_15, %c0_16] : memref<2x34xbf16, #tpu.memory_space<vmem>>, vector<2x34xbf16>
    %56 = arith.truncf %54 : vector<34x128xf32> to vector<34x128xbf16>
    %cst_17 = arith.constant dense<0.000000e+00> : vector<2x128xf32>
    %57 = tpu.matmul %55, %56, %cst_17 {dimension_numbers = #tpu.dot_dimension_numbers<[1], [0], [0], [1], [0, 0, 1, 1], [], []>} : vector<2x34xbf16>, vector<34x128xbf16>, vector<2x128xf32> -> vector<2x128xf32>
    %58 = arith.truncf %57 : vector<2x128xf32> to vector<2x128xbf16>
    %c0_18 = arith.constant 0 : index
    %c0_19 = arith.constant 0 : index
    %59 = vector.load %arg8[%c0_18, %c0_19] : memref<128x128xbf16, #tpu.memory_space<vmem>>, vector<128x128xbf16>
    %cst_20 = arith.constant dense<0.000000e+00> : vector<2x128xf32>
    %60 = tpu.matmul %58, %59, %cst_20 {dimension_numbers = #tpu.dot_dimension_numbers<[1], [0], [0], [1], [0, 0, 1, 1], [], []>} : vector<2x128xbf16>, vector<128x128xbf16>, vector<2x128xf32> -> vector<2x128xf32>
    %c0_21 = arith.constant 0 : index
    %c0_22 = arith.constant 0 : index
    %61 = vector.load %arg9[%c0_21, %c0_22] : memref<1x128xf32, #tpu.memory_space<vmem>>, vector<1x128xf32>
    %62 = vector.broadcast %61 : vector<1x128xf32> to vector<2x128xf32>
    %63 = arith.addf %60, %62 : vector<2x128xf32>
    %c0_23 = arith.constant 0 : index
    %c0_24 = arith.constant 0 : index
    %64 = vector.load %arg10[%c0_23, %c0_24] : memref<2x128xf32, #tpu.memory_space<vmem>>, vector<2x128xf32>
    tpu.vector_store %arg10[%c0_23, %c0_24], %63 {strides = array<i32>} : memref<2x128xf32, #tpu.memory_space<vmem>>, vector<2x128xf32>,
    return
  }
}

</mosaic_0001>

<bundles_post_ra>
// kernel: tpu_custom_call.1
= control target key start
LH: loop header
LB: loop body
LE: loop exit
PB: predicated region body
PF: predicated region fallthrough
CT: control target
= control target key end

     0   :  { %15 = vsyncpa [#allocation3], 0  ;;  %s1152_s0 = inlined_call_operand.hbm [shape: f32[36,128], index: 0, kind: input, shape index: {}]   ;;  %s1153_s1 = inlined_call_operand.hbm [shape: f32[36,128], index: 1, kind: input, shape index: {}]   ;;  %s1154_s2 = inlined_call_operand.hbm [shape: f32[36,128], index: 2, kind: input, shape index: {}]   ;;  %s1155_s3 = inlined_call_operand.hbm [shape: f32[9,128], index: 3, kind: input, shape index: {}]   ;;  %s1156_s4 = inlined_call_operand.vmem [shape: f32[1,128], index: 4, kind: input, shape index: {}]   ;;  %s1157_s5 = inlined_call_operand.hbm [shape: bf16[128,128], index: 5, kind: input, shape index: {}]   ;;  %s1158_s6 = inlined_call_operand.vmem [shape: f32[1,128], index: 6, kind: input, shape index: {}]   ;;  %s1159_s7 = inlined_call_operand.vmem [shape: bf16[2,34], index: 7, kind: input, shape index: {}]   ;;  %s1160_s8 = inlined_call_operand.hbm [shape: bf16[128,128], index: 8, kind: input, shape index: {}]   ;;  %s1161_s9 = inlined_call_operand.vmem [shape: f32[1,128], index: 9, kind: input, shape index: {}]   ;;  %s1162_s10 = inlined_call_operand.hbm [shape: f32[2,128], index: 10, kind: output, shape index: {}]  }
   0x1   :  { %16 = vsyncpa [#allocation6], 0 }
   0x2   :  { %17 = vsyncpa [#allocation9], 0 }
   0x3   :  { %18 = vsyncpa [#allocation12], 0 }
   0x4   :  { %19 = vsyncpa [#allocation4], 0  ;;  %s914_s13 = smov [#allocation5]   ;;  %s915_s15 = smov [#allocation8]  }
   0x5   :  { %s37_s14 = sshll.u32 %s914_s13, 4  ;;  %s61_s16 = sshll.u32 %s915_s15, 4  ;;  %s38_s14 = int_to_ptr.vmem [resolvable:$true] %s37_s14  ;;  %s62_s16 = int_to_ptr.vmem [resolvable:$true] %s61_s16 }
   0x6   :  { %s772_s17 = scalar_lea.vmem %s38_s14, 640  ;;  %p777_p1 = scmp.lt.s32.totalorder %s38_s14, %s38_s14 }
   0x7   :  { %p773_p0 = scmp.ne.s32.totalorder %s38_s14, %s772_s17  ;;  %p778_p2 = scmp.lt.s32.totalorder %s772_s17, %s772_s17 }
   0x9   :  { %p779_p3 = por %p778_p2, %p777_p1 }
   0xb   :  { %p780_p4 = pnand %p779_p3, %p773_p0 }
   0xd   :  { %783 = shalt.err (!%p780_p4)
}
   0xe   :  { %s916_s18 = smov 128   ;;  %s917_s19 = smov 8  }
   0xf   :  { %43 = dma.hbm_to_vmem [thread:$0]  %s1153_s1, 640, %s38_s14, [#allocation6], %s916_s18, %s916_s18, %s917_s19  }
  0x10   :  { %s792_s22 = scalar_lea.vmem %s62_s16, 256  ;;  %p797_p6 = scmp.lt.s32.totalorder %s62_s16, %s62_s16 }
  0x11   :  { %p793_p5 = scmp.ne.s32.totalorder %s62_s16, %s792_s22  ;;  %p798_p7 = scmp.lt.s32.totalorder %s792_s22, %s792_s22 }
  0x13   :  { %p799_p8 = por %p798_p7, %p797_p6 }
  0x15   :  { %p800_p9 = pnand %p799_p8, %p793_p5 }
  0x17   :  { %803 = shalt.err (!%p800_p9)
}
  0x18   :  { %67 = dma.hbm_to_vmem [thread:$0]  %s1155_s3, 256, %s62_s16, [#allocation9], %s916_s18, %s916_s18, %s917_s19  }
  0x19   :  { %s918_s25 = smov [#allocation2]   ;;  %s919_s27 = smov [#allocation7]  }
  0x1a   :  { %s25_s26 = sshll.u32 %s918_s25, 4  ;;  %s49_s28 = sshll.u32 %s919_s27, 4  ;;  %s26_s26 = int_to_ptr.vmem [resolvable:$true] %s25_s26  ;;  %s50_s28 = int_to_ptr.vmem [resolvable:$true] %s49_s28 }
  0x1b   :  { %s812_s1 = scalar_lea.vmem %s26_s26, 640  ;;  %p817_p11 = scmp.lt.s32.totalorder %s26_s26, %s26_s26 }
  0x1c   :  { %p813_p10 = scmp.ne.s32.totalorder %s26_s26, %s812_s1  ;;  %p818_p12 = scmp.lt.s32.totalorder %s812_s1, %s812_s1 }
  0x1e   :  { %p819_p13 = por %p818_p12, %p817_p11 }
  0x20   :  { %p820_p0 = pnand %p819_p13, %p813_p10 }
  0x22   :  { %823 = shalt.err (!%p820_p0)
}
  0x23   :  { %31 = dma.hbm_to_vmem [thread:$0]  %s1152_s0, 640, %s26_s26, [#allocation3], %s916_s18, %s916_s18, %s917_s19  }
  0x24   :  { %s832_s3 = scalar_lea.vmem %s50_s28, 640  ;;  %p837_p2 = scmp.lt.s32.totalorder %s50_s28, %s50_s28 }
  0x25   :  { %p833_p1 = scmp.ne.s32.totalorder %s50_s28, %s832_s3  ;;  %p838_p3 = scmp.lt.s32.totalorder %s832_s3, %s832_s3 }
  0x27   :  { %p839_p4 = por %p838_p3, %p837_p2 }
  0x29   :  { %p840_p5 = pnand %p839_p4, %p833_p1 }
  0x2b   :  { %843 = shalt.err (!%p840_p5)
}
  0x2c   :  { %55 = dma.hbm_to_vmem [thread:$0]  %s1154_s2, 640, %s50_s28, [#allocation6], %s916_s18, %s916_s18, %s917_s19  }
  0x2d   :  { %s920_s13 = smov [#allocation10]  }
  0x2e   :  { %s75_s14 = sshll.u32 %s920_s13, 4  ;;  %s76_s14 = int_to_ptr.vmem [resolvable:$true] %s75_s14 }
  0x2f   :  { %s852_s15 = scalar_lea.vmem %s76_s14, 1024  ;;  %p857_p7 = scmp.lt.s32.totalorder %s76_s14, %s76_s14 }
  0x30   :  { %p853_p6 = scmp.ne.s32.totalorder %s76_s14, %s852_s15  ;;  %p858_p8 = scmp.lt.s32.totalorder %s852_s15, %s852_s15 }
  0x32   :  { %p859_p9 = por %p858_p8, %p857_p7 }
  0x34   :  { %p860_p10 = pnand %p859_p9, %p853_p6 }
  0x36   :  { %863 = shalt.err (!%p860_p10)
}
  0x37   :  { %s921_s0 = smov 64   ;;  %s922_s16 = smov 4  }
  0x38   :  { %81 = dma.hbm_to_vmem [thread:$0]  %s1157_s5, 1024, %s76_s14, [#allocation9], %s921_s0, %s921_s0, %s922_s16  }
  0x39   :  { %s923_s21 = smov [#allocation11]  }
  0x3a   :  { %s91_s22 = sshll.u32 %s923_s21, 4  ;;  %s92_s22 = int_to_ptr.vmem [resolvable:$true] %s91_s22 }
  0x3b   :  { %s872_s2 = scalar_lea.vmem %s92_s22, 1024  ;;  %p877_p12 = scmp.lt.s32.totalorder %s92_s22, %s92_s22 }
  0x3c   :  { %p873_p11 = scmp.ne.s32.totalorder %s92_s22, %s872_s2  ;;  %p878_p13 = scmp.lt.s32.totalorder %s872_s2, %s872_s2 }
  0x3e   :  { %p879_p0 = por %p878_p13, %p877_p12 }
  0x40   :  { %p880_p1 = pnand %p879_p0, %p873_p11 }
  0x42   :  { %883 = shalt.err (!%p880_p1)
}
  0x43   :  { %97 = dma.hbm_to_vmem [thread:$0]  %s1160_s8, 1024, %s92_s22, [#allocation12], %s921_s0, %s921_s0, %s922_s16  }
  0x44   :  { %904 = dma.done.wait [#allocation3], 640  }
  0x45   :  { %905 = vsyncadd [#allocation3], 4294966656 }
  0x46   :  { %906 = dma.done.wait [#allocation6], 1280  }
  0x47   :  { %907 = vsyncadd [#allocation6], 4294966016 }
  0x48   :  { %908 = dma.done.wait [#allocation9], 1280  }
  0x49   :  { %909 = vsyncadd [#allocation9], 4294966016 }
  0x4a   :  { %910 = dma.done.wait [#allocation12], 1024  }
  0x4b   :  { %911 = vsyncadd [#allocation12], 4294966272  ;;  %v924_v0 = vmov 0.0   ;;  %vm925_vm0 = vmmov 0   ;;  %v748_v1 = vld [vmem:[#allocation10 + $0x38] sm:$0xff]   ;;  %v136_v2 = vlaneseq  ;;  %v749_v3 = vld [vmem:[#allocation10 + $0x30] sm:$0xff]  }
  0x4c   :  { %677 = vmatprep.subr.bf16.mxu0 %v924_v0  ;;  %693 = vmatprep.mubr.msk.bf16.mxu0 %vm925_vm0, %v924_v0  ;;  %v750_v5 = vld [vmem:[#allocation10 + $0x28] sm:$0xff]   ;;  %v751_v14 = vld [vmem:[#allocation10 + $0x20] sm:$0xff]   ;;  %v119_v15 = vld [vmem:[#allocation2] sm:$0xff]  ;;  %vm252_vm1 = vcmask 1046528   ;;  %vm277_vm2 = vcmask 1045504   ;;  %vm457_vm3 = vcmask 1040384  }
  0x4d   :  { %705 = vmatprep.subr.bf16.mxu1 %v924_v0  ;;  %711 = vmatprep.mubr.msk.bf16.mxu1 %vm925_vm0, %v924_v0  ;;  %v137_v4 = vshrl.u32 %v136_v2, 7  ;;  %v120_v16 = vld [vmem:[#allocation2 + $0x8] sm:$0xff]  ;;  %v134_v17 = vld [vmem:[#allocation8] sm:$0xff]  ;;  %v752_v18 = vld [vmem:[#allocation10 + $0x18] sm:$0xff]   ;;  %vm453_vm4 = vcmask 277504   ;;  %s926_s26 = smov [#allocation13]  }
  0x4e   :  { %678 = vmatpush3.bf16.msra.mxu0 %v748_v1  ;;  %v1021_v19 = vld [vmem:[#allocation2 + $0x10] sm:$0xff]  ;;  %v124_v20 = vld [vmem:[#allocation5] sm:$0xff]  ;;  %v1031_v26 = vld [vmem:[#allocation5 + $0x10] sm:$0xff]  ;;  %s620_s27 = sshll.u32 %s926_s26, 4  ;;  %s621_s27 = int_to_ptr.vmem [resolvable:$true] %s620_s27 }
  0x4f   :  { %679 = vmatprep.subr.bf16.mxu0 %v924_v0  ;;  %v138_v6 = vsub.s32 0, %v137_v4  ;;  %v147_v7 = vsub.s32 1, %v137_v4  ;;  %v161_v8 = vsub.s32 2, %v137_v4  ;;  %v175_v9 = vsub.s32 3, %v137_v4  ;;  %v125_v21 = vld [vmem:[#allocation5 + $0x8] sm:$0xff]  ;;  %v130_v28 = vld [vmem:[#allocation7 + $0x8] sm:$0xff]  ;;  %p889_p3 = scmp.lt.s32.totalorder %s621_s27, %s621_s27 }
  0x50   :  { %v184_v10 = vsub.s32 4, %v137_v4  ;;  %v198_v11 = vsub.s32 5, %v137_v4  ;;  %v212_v12 = vsub.s32 6, %v137_v4  ;;  %v221_v13 = vsub.s32 7, %v137_v4  ;;  %v129_v27 = vld [vmem:[#allocation7] sm:$0xff]  ;;  %v1041_v33 = vld [vmem:[#allocation7 + $0x10] sm:$0xff] }
  0x51   :  { %v1023_v22 = vrot.slane %v134_v17, %v138_v6  ;;  %v1025_v23 = vrot.slane %v134_v17, %v147_v7  ;;  %v1027_v24 = vrot.slane %v134_v17, %v161_v8  ;;  %v1029_v25 = vrot.slane %v134_v17, %v175_v9  ;;  %v753_v42 = vld [vmem:[#allocation10 + $0x10] sm:$0xff]   ;;  %v1052_v43 = vld [vmem:[#allocation8 + $0x8] ss:$0 sm:$0xff]  ;;  %s884_s28 = scalar_lea.vmem %s621_s27, 32 }
  0x52   :  { %680 = vmatpush3.bf16.msra.mxu0 %v749_v3  ;;  %v1033_v29 = vrot.slane %v134_v17, %v184_v10  ;;  %v1035_v30 = vrot.slane %v134_v17, %v198_v11  ;;  %v1037_v31 = vrot.slane %v134_v17, %v212_v12  ;;  %v1039_v32 = vrot.slane %v134_v17, %v221_v13  ;;  %p885_p2 = scmp.ne.s32.totalorder %s621_s27, %s884_s28  ;;  %p890_p4 = scmp.lt.s32.totalorder %s884_s28, %s884_s28 }
  0x53   :  { %681 = vmatprep.subr.bf16.mxu0 %v924_v0  ;;  %v140_v34 = vmul.f32 %v1023_v22, %v119_v15  ;;  %v141_v35 = vmul.f32 %v1023_v22, %v120_v16  ;;  %v149_v36 = vmul.f32 %v1025_v23, %v124_v20  ;;  %v150_v37 = vmul.f32 %v1025_v23, %v125_v21 }
  0x54   :  { %v163_v38 = vmul.f32 %v1027_v24, %v129_v27  ;;  %v164_v39 = vmul.f32 %v1027_v24, %v130_v28  ;;  %v177_v40 = vmul.f32 %v1029_v25, %v119_v15  ;;  %v178_v41 = vmul.f32 %v1029_v25, %v120_v16  ;;  %p891_p5 = por %p890_p4, %p889_p3 }
  0x55   :  { %v154_v44 = vadd.f32 %v149_v36, %v140_v34  ;;  %v155_v45 = vadd.f32 %v150_v37, %v141_v35  ;;  %v179_v46 = vmul.f32 %v1029_v25, %v1021_v19  ;;  %v186_v47 = vmul.f32 %v1033_v29, %v124_v20  ;;  %v755_v35 = vld [vmem:[#allocation10] sm:$0xff]  }
  0x56   :  { %682 = vmatpush3.bf16.msra.mxu0 %v750_v5  ;;  %v187_v48 = vmul.f32 %v1033_v29, %v125_v21  ;;  %v188_v49 = vmul.f32 %v1033_v29, %v1031_v26  ;;  %v200_v50 = vmul.f32 %v1035_v30, %v129_v27  ;;  %v201_v51 = vmul.f32 %v1035_v30, %v130_v28  ;;  %v754_v5 = vld [vmem:[#allocation10 + $0x8] sm:$0xff]   ;;  %p892_p6 = pnand %p891_p5, %p885_p2 }
  0x57   :  { %683 = vmatprep.subr.bf16.mxu0 %v924_v0  ;;  %v168_v52 = vadd.f32 %v163_v38, %v154_v44  ;;  %v169_v53 = vadd.f32 %v164_v39, %v155_v45  ;;  %v191_v54 = vadd.f32 %v186_v47, %v177_v40  ;;  %v202_v55 = vmul.f32 %v1035_v30, %v1041_v33  ;;  %v127_v39 = vld [vmem:[#allocation5 + $0x18] sm:$0xff] }
  0x58   :  { %v192_v56 = vadd.f32 %v187_v48, %v178_v41  ;;  %v193_v57 = vadd.f32 %v188_v49, %v179_v46  ;;  %v214_v58 = vmul.f32 %v1037_v31, %v119_v15  ;;  %v215_v59 = vmul.f32 %v1037_v31, %v120_v16  ;;  %v128_v41 = vld [vmem:[#allocation5 + $0x20] sm:$0xf]  ;;  %v633_v47 = vld [vmem:[%s1156_s4] ss:$0 sm:$0xff]  ;;  %v133_v48 = vld [vmem:[#allocation7 + $0x20] sm:$0xf] }
  0x59   :  { %v205_v60 = vadd.f32 %v200_v50, %v191_v54  ;;  %v216_v61 = vmul.f32 %v1037_v31, %v1021_v19  ;;  %v223_v62 = vmul.f32 %v1039_v32, %v124_v20  ;;  %v224_v63 = vmul.f32 %v1039_v32, %v125_v21 }
  0x5a   :  { %684 = vmatpush3.bf16.msra.mxu0 %v751_v14  ;;  %v206_v1 = vadd.f32 %v201_v51, %v192_v56  ;;  %v1071_v2 = vadd.f32 %v202_v55, %v193_v57  ;;  %v225_v3 = vmul.f32 %v1039_v32, %v1031_v26  ;;  %v237_v4 = vmul.f32 %v1052_v43, %v129_v27  ;;  %v122_v14 = vld [vmem:[#allocation2 + $0x18] sm:$0xff] }
  0x5b   :  { %685 = vmatprep.subr.bf16.mxu0 %v924_v0  ;;  %v228_v6 = vadd.f32 %v223_v62, %v214_v58  ;;  %v229_v7 = vadd.f32 %v224_v63, %v215_v59  ;;  %v238_v8 = vmul.f32 %v1052_v43, %v130_v28  ;;  %v239_v9 = vmul.f32 %v1052_v43, %v1041_v33  ;;  %v123_v28 = vld [vmem:[#allocation2 + $0x20] sm:$0xf] }
  0x5c   :  { %v230_v10 = vadd.f32 %v225_v3, %v216_v61  ;;  %v253_v11 = vrot.slane %v205_v60, 1  ;;  %v254_v12 = vrot.slane %v206_v1, 1  ;;  %v256_v13 = vrot.slane %v1071_v2, 1 }
  0x5d   :  { %v242_v15 = vadd.f32 %v237_v4, %v228_v6  ;;  %v243_v16 = vadd.f32 %v238_v8, %v229_v7  ;;  %v142_v17 = vmul.f32 %v1023_v22, %v1021_v19  ;;  %v151_v34 = vmul.f32 %v1025_v23, %v1031_v26 }
  0x5e   :  { %686 = vmatpush3.bf16.msra.mxu0 %v752_v18  ;;  %v143_v18 = vmul.f32 %v1023_v22, %v122_v14  ;;  %v1084_v20 = vadd.f32 %v239_v9, %v230_v10  ;;  %v255_v21 = vsel %vm252_vm1, %v253_v11, %v254_v12  ;;  %v257_v27 = vsel %vm252_vm1, %v254_v12, %v256_v13 }
  0x5f   :  { %687 = vmatprep.subr.bf16.mxu0 %v924_v0  ;;  %v267_v36 = vadd.f32 %v255_v21, %v168_v52  ;;  %v268_v37 = vadd.f32 %v257_v27, %v169_v53  ;;  %v278_v38 = vrot.slane %v242_v15, 2  ;;  %v279_v19 = vrot.slane %v243_v16, 2 }
  0x60   :  { %v281_v40 = vrot.slane %v1084_v20, 2  ;;  %v152_v44 = vmul.f32 %v1025_v23, %v127_v39  ;;  %v156_v45 = vadd.f32 %v151_v34, %v142_v17  ;;  %v165_v46 = vmul.f32 %v1027_v24, %v1041_v33 }
  0x61   :  { %v280_v26 = vsel %vm277_vm2, %v278_v38, %v279_v19  ;;  %v180_v50 = vmul.f32 %v1029_v25, %v122_v14  ;;  %v181_v51 = vmul.f32 %v1029_v25, %v123_v28  ;;  %v189_v56 = vmul.f32 %v1033_v29, %v127_v39 }
  0x62   :  { %688 = vmatpush3.bf16.msra.mxu0 %v753_v42  ;;  %v132_v42 = vld [vmem:[#allocation7 + $0x18] sm:$0xff]  ;;  %v282_v52 = vsel %vm277_vm2, %v279_v19, %v281_v40  ;;  %v292_v53 = vadd.f32 %v280_v26, %v267_v36  ;;  %v157_v54 = vadd.f32 %v152_v44, %v143_v18  ;;  %v170_v55 = vadd.f32 %v165_v46, %v156_v45 }
  0x63   :  { %689 = vmatprep.subr.bf16.mxu0 %v924_v0  ;;  %v166_v49 = vmul.f32 %v1027_v24, %v132_v42  ;;  %v293_v33 = vadd.f32 %v282_v52, %v268_v37  ;;  %v190_v57 = vmul.f32 %v1033_v29, %v128_v41  ;;  %v203_v58 = vmul.f32 %v1035_v30, %v132_v42 }
  0x64   :  { %v304_v59 = vadd.f32 %v633_v47, %v292_v53  ;;  %v204_v61 = vmul.f32 %v1035_v30, %v133_v48  ;;  %v217_v62 = vmul.f32 %v1037_v31, %v122_v14  ;;  %v194_v63 = vadd.f32 %v189_v56, %v180_v50 }
  0x65   :  { %v171_v60 = vadd.f32 %v166_v49, %v157_v54  ;;  %v305_v25 = vadd.f32 %v633_v47, %v293_v33  ;;  %v195_v1 = vadd.f32 %v190_v57, %v181_v51  ;;  %v218_v3 = vmul.f32 %v1037_v31, %v123_v28 }
  0x66   :  { %690 = vmatpush3.bf16.msra.mxu0 %v754_v5  ;;  %v309_v4 = vmax.f32 %v304_v59, 0.0  ;;  %v226_v5 = vmul.f32 %v1039_v32, %v127_v39  ;;  %v227_v6 = vmul.f32 %v1039_v32, %v128_v41  ;;  %v240_v29 = vmul.f32 %v1052_v43, %v132_v42 }
  0x67   :  { %691 = vmatprep.subr.bf16.mxu0 %v924_v0  ;;  %v310_v7 = vmax.f32 %v305_v25, 0.0  ;;  %v208_v8 = vadd.f32 %v203_v58, %v194_v63  ;;  %v209_v9 = vadd.f32 %v204_v61, %v195_v1  ;;  %v241_v10 = vmul.f32 %v1052_v43, %v133_v48 }
  0x68   :  { %v231_v30 = vadd.f32 %v226_v5, %v217_v62  ;;  %v232_v11 = vadd.f32 %v227_v6, %v218_v3  ;;  %v144_v12 = vmul.f32 %v1023_v22, %v123_v28  ;;  %v153_v14 = vmul.f32 %v1025_v23, %v128_v41 }
  0x69   :  { %v314_v15 = vpack.c.bf16 %v310_v7, %v309_v4  ;;  %v258_v31 = vrot.slane %v208_v8, 1  ;;  %v260_v16 = vrot.slane %v209_v9, 1  ;;  %v167_v17 = vmul.f32 %v1027_v24, %v133_v48  ;;  %v449_v7 = vld [vmem:[%s1159_s7] sm:$0x1]  ;;  %v757_v9 = vld [vmem:[#allocation11 + $0x30] sm:$0xff]  }
  0x6a   :  { %692 = vmatpush3.bf16.msra.mxu0 %v755_v35  ;;  %v245_v18 = vadd.f32 %v240_v29, %v231_v30  ;;  %v246_v32 = vadd.f32 %v241_v10, %v232_v11  ;;  %v158_v20 = vadd.f32 %v153_v14, %v144_v12  ;;  %v756_v8 = vld [vmem:[#allocation11 + $0x38] sm:$0xff]   ;;  %v758_v10 = vld [vmem:[#allocation11 + $0x28] sm:$0xff]   ;;  %v759_v30 = vld [vmem:[#allocation11 + $0x20] sm:$0xff]  }
  0x6b   :  { %v259_v21 = vsel %vm252_vm1, %v256_v13, %v258_v31  ;;  %v261_v43 = vsel %vm252_vm1, %v258_v31, %v260_v16  ;;  %v760_v11 = vld [vmem:[#allocation11 + $0x18] sm:$0xff]   ;;  %v761_v12 = vld [vmem:[#allocation11 + $0x10] sm:$0xff]   ;;  %v762_v14 = vld [vmem:[#allocation11 + $0x8] sm:$0xff]  }
  0x6c   :  { %v269_v22 = vadd.f32 %v259_v21, %v170_v55  ;;  %v270_v23 = vadd.f32 %v261_v43, %v171_v60  ;;  %v283_v27 = vrot.slane %v245_v18, 2  ;;  %v285_v28 = vrot.slane %v246_v32, 2 }
  0x6d   :  { %694 = vmatmul.mubr.bf16.vlgmr.msra.gmra.mxu0 %v314_v15  ;;  %v172_v34 = vadd.f32 %v167_v17, %v158_v20  ;;  %v763_v15 = vld [vmem:[#allocation11] sm:$0xff]   ;;  %v644_v20 = vld [vmem:[%s1161_s9] ss:$0 sm:$0xff] }
  0x6e   :  { %697 = vmatprep.mubr.msk.bf16.mxu0 %vm925_vm0, %v924_v0  ;;  %v284_v24 = vsel %vm277_vm2, %v281_v40, %v283_v27  ;;  %v286_v35 = vsel %vm277_vm2, %v283_v27, %v285_v28 }
  0x6f   :  { %v294_v36 = vadd.f32 %v284_v24, %v269_v22  ;;  %v295_v37 = vadd.f32 %v286_v35, %v270_v23  ;;  %v271_v38 = vadd.f32 %v260_v16, %v172_v34 }
  0x71   :  { %v306_v2 = vadd.f32 %v633_v47, %v294_v36  ;;  %v307_v19 = vadd.f32 %v633_v47, %v295_v37  ;;  %v296_v13 = vadd.f32 %v285_v28, %v271_v38 }
  0x73   :  { %v311_v39 = vmax.f32 %v306_v2, 0.0  ;;  %v312_v41 = vmax.f32 %v307_v19, 0.0  ;;  %v308_v42 = vadd.f32 %v633_v47, %v296_v13  ;;  %v634_v47 = vld [vmem:[%s1158_s6] ss:$0 sm:$0xff] }
  0x75   :  { %v315_v44 = vpack.c.bf16 %v312_v41, %v311_v39  ;;  %v313_v45 = vmax.f32 %v308_v42, 0.0 }
  0x77   :  { %698 = vmatmul.mubr.bf16.gmra.mxu0 %v315_v44  ;;  %v316_v46 = vpack.c.bf16 %v313_v45, %v313_v45 }
  0x78   :  { %701 = vmatprep.mubr.msk.bf16.mxu0 %vm925_vm0, %v924_v0 }
  0x7f   :  { %702 = vmatmul.mubr.bf16.gmra.mxu0 %v316_v46 }
 0x12d   :  { %v422_v40 = vpop.f32.mrf.mxu0 }
 0x12e   :  { %v423_v1 = vadd.f32 %v634_v47, %v422_v40 }
 0x12f   :  { %v695_v26 = vpop.f32.mrf.mxu0 }
 0x130   :  { %v444_v6 = vmax.f32 %v423_v1, 0.0 }
 0x131   :  { %v425_v48 = vpop.f32.mrf.mxu0 }
 0x132   :  { %v426_v61 = vadd.f32 %v634_v47, %v425_v48 }
 0x133   :  { %v696_v49 = vpop.f32.mrf.mxu0 }
 0x134   :  { %v445_v4 = vmax.f32 %v426_v61, 0.0 }
 0x136   :  { %v450_v29 = vpack.c.bf16 %v445_v4, %v444_v6 }
 0x137   :  { %v430_v50 = vpop.f32.mrf.mxu0 }
 0x138   :  { %v431_v58 = vadd.f32 %v634_v47, %v430_v50 }
 0x139   :  { %v699_v51 = vpop.f32.mrf.mxu0 }
 0x13a   :  { %v446_v3 = vmax.f32 %v431_v58, 0.0 }
 0x13b   :  { %v433_v52 = vpop.f32.mrf.mxu0 }
 0x13c   :  { %v434_v33 = vadd.f32 %v634_v47, %v433_v52 }
 0x13d   :  { %v700_v53 = vpop.f32.mrf.mxu0 }
 0x13e   :  { %v447_v62 = vmax.f32 %v434_v33, 0.0 }
 0x13f   :  { %v438_v54 = vpop.f32.mrf.mxu0 }
 0x140   :  { %v439_v55 = vadd.f32 %v634_v47, %v438_v54  ;;  %v451_v5 = vpack.c.bf16 %v447_v62, %v446_v3 }
 0x141   :  { %v703_v56 = vpop.f32.mrf.mxu0 }
 0x142   :  { %v448_v57 = vmax.f32 %v439_v55, 0.0 }
 0x143   :  { %v441_v59 = vpop.f32.mrf.mxu0 }
 0x144   :  { %v452_v60 = vpack.c.bf16 %v448_v57, %v448_v57 }
 0x145   :  { %v704_v25 = vpop.f32.mrf.mxu0 }
 0x146   :  { %v459_v63 = vsel %vm457_vm3, %v452_v60, 0 }
 0x147   :  { %706 = vmatpush3.bf16.msra.mxu1 %v459_v63 }
 0x148   :  { %707 = vmatprep.subr.bf16.mxu1 %v924_v0 }
 0x14b   :  { %708 = vmatpush3.bf16.msra.mxu1 %v451_v5 }
 0x14c   :  { %709 = vmatprep.subr.bf16.mxu1 %v924_v0 }
 0x14f   :  { %710 = vmatpush3.bf16.msra.mxu1 %v450_v29 }
 0x150   :  { %715 = vmatprep.subr.bf16.mxu1 %v924_v0 }
 0x152   :  { %712 = vmatmul.mubr.msk.bf16.vlgmr.msra.gmra.mxu1 %vm453_vm4, %v449_v7 }
 0x153   :  { %716 = vmatpush3.bf16.msra.mxu1 %v756_v8  ;;  %731 = vmatprep.mubr.msk.bf16.mxu1 %vm925_vm0, %v924_v0 }
 0x154   :  { %717 = vmatprep.subr.bf16.mxu1 %v924_v0 }
 0x157   :  { %718 = vmatpush3.bf16.msra.mxu1 %v757_v9 }
 0x158   :  { %719 = vmatprep.subr.bf16.mxu1 %v924_v0 }
 0x15b   :  { %720 = vmatpush3.bf16.msra.mxu1 %v758_v10 }
 0x15c   :  { %721 = vmatprep.subr.bf16.mxu1 %v924_v0 }
 0x15f   :  { %722 = vmatpush3.bf16.msra.mxu1 %v759_v30 }
 0x160   :  { %723 = vmatprep.subr.bf16.mxu1 %v924_v0 }
 0x163   :  { %724 = vmatpush3.bf16.msra.mxu1 %v760_v11 }
 0x164   :  { %725 = vmatprep.subr.bf16.mxu1 %v924_v0 }
 0x167   :  { %726 = vmatpush3.bf16.msra.mxu1 %v761_v12 }
 0x168   :  { %727 = vmatprep.subr.bf16.mxu1 %v924_v0 }
 0x16b   :  { %728 = vmatpush3.bf16.msra.mxu1 %v762_v14 }
 0x16c   :  { %729 = vmatprep.subr.bf16.mxu1 %v924_v0 }
 0x16f   :  { %730 = vmatpush3.bf16.msra.mxu1 %v763_v15 }
 0x212   :  { %v495_v31 = vpop.f32.mrf.mxu1 }
 0x213   :  { %v501_v16 = vpack.c.bf16 %v495_v31, %v495_v31 }
 0x214   :  { %v713_v17 = vpop.f32.mrf.mxu1 }
 0x215   :  { %732 = vmatmul.mubr.bf16.vlgmr.msra.gmra.mxu1 %v501_v16 }
 0x216   :  { %v498_v18 = vpop.f32.mrf.mxu1 }
 0x218   :  { %v714_v32 = vpop.f32.mrf.mxu1 }
 0x2d5   :  { %v607_v21 = vpop.f32.mrf.mxu1 }
 0x2d6   :  { %v608_v43 = vadd.f32 %v644_v20, %v607_v21 }
 0x2d7   :  { %v733_v22 = vpop.f32.mrf.mxu1 }
 0x2d8   :  { %613 = vst [vmem:[#allocation13] sm:$0x3] %v608_v43 }
 0x2d9   :  { %v610_v0 = vpop.f32.mrf.mxu1 }
 0x2da   :  { %895 = shalt.err (!%p892_p6)
}
 0x2db   :  { %623 = dma.vmem_to_hbm [thread:$0]  %s621_s27, 32, %s1162_s10, [#allocation4]   ;;  %v734_v23 = vpop.f32.mrf.mxu1 }
 0x2dc   :  { %912 = dma.done.wait [#allocation4], 32  }
 0x2dd   :  { %913 = vsyncadd [#allocation4], 4294967264 }
 0x2de   :  { %627 = vsyncpa [#allocation3], 1 }
 0x2df   :  { %628 = vsyncpa [#allocation6], 1 }
 0x2e0   :  { %629 = vsyncpa [#allocation9], 1 }
 0x2e1   :  { %630 = vsyncpa [#allocation12], 1 }
 0x2e2   :  { %631 = vsyncpa [#allocation4], 1 }

</bundles_post_ra>
